<compile_context>
chip_gen: v7x
topology: tpu7x:2x2x1
jax: 0.10.0
libtpu: 0.0.40
codegen_flags: <defaults>
</compile_context>

<pallas_src>
import functools

import jax
import jax.numpy as jnp
from jax.experimental import pallas as pl
from jax.experimental.pallas import tpu as pltpu


LANE = 128          # TPU lane width
BF16_ROWS = 16      # packed bf16 vreg tile is (16, 128)

# Conservative VMEM budget / scoped limit: fits v7x's 64 MiB/TC physical VMEM
# with headroom (and trivially fits v5e/v6e's 128 MiB).
_VMEM_BUDGET = 40 * 1024 * 1024
_VMEM_LIMIT = 48 * 1024 * 1024


def _round_up(n, m):
    return ((n + m - 1) // m) * m


def _mlp_kernel(x_ref, w1_ref, b1_ref, w2_ref, b2_ref, w3_ref, b3_ref, o_ref):
    # Cast streamed f32 activations to bf16 in-kernel (VPU cast hides under DMA).
    x = x_ref[...].astype(jnp.bfloat16)
    # fc1: bf16 x bf16 -> f32 accumulate; bias + ReLU in f32 (v5e-safe).
    h1 = jnp.dot(x, w1_ref[...], preferred_element_type=jnp.float32)
    h1 = jnp.maximum(h1 + b1_ref[...], 0.0).astype(jnp.bfloat16)
    # fc2
    h2 = jnp.dot(h1, w2_ref[...], preferred_element_type=jnp.float32)
    h2 = jnp.maximum(h2 + b2_ref[...], 0.0).astype(jnp.bfloat16)
    # fc3 (lane-dense: output width zero-padded to a multiple of 128)
    h3 = jnp.dot(h2, w3_ref[...], preferred_element_type=jnp.float32)
    o_ref[...] = (h3 + b3_ref[...]).astype(o_ref.dtype)


def prepare_params(params):
    """One-time conversion of f32 (in,out) weights into padded bf16 kernel params.

    Done outside the jitted forward so per-call latency never pays for the
    casts / padding (hoists weight casts out of the per-call path).
    """
    w1, b1 = params["w1"], params["b1"]   # (F, 256), (1, 256)
    w2, b2 = params["w2"], params["b2"]   # (256, 128), (1, 128)
    w3, b3 = params["w3"], params["b3"]   # (128, E), (1, E)
    F, E = w1.shape[0], w3.shape[1]
    F_pad = _round_up(F, LANE)
    E_pad = _round_up(E, LANE)
    if F_pad != F:   # lane-align the fc1 contraction dim (zero rows are exact)
        w1 = jnp.pad(w1, ((0, F_pad - F), (0, 0)))
    if E_pad != E:   # lane-dense output width
        w3 = jnp.pad(w3, ((0, 0), (0, E_pad - E)))
        b3 = jnp.pad(b3, ((0, 0), (0, E_pad - E)))
    return {
        "w1": w1.astype(jnp.bfloat16), "b1": b1.astype(jnp.float32),
        "w2": w2.astype(jnp.bfloat16), "b2": b2.astype(jnp.float32),
        "w3": w3.astype(jnp.bfloat16), "b3": b3.astype(jnp.float32),
    }


def _pick_block(B, F_pad, H1, H2, E_pad, block_b):
    """Batch tile: lane/MXU aligned, >=2 grid steps for v7x's 2 TCs on medium+
    batches, shrunk until the double-buffered VMEM footprint fits the budget."""
    if B <= LANE:
        # Tiny batch: a single step over the whole batch, 16-row aligned so the
        # packed bf16 (16,128) tile and MXU M passes stay full.
        return _round_up(max(B, BF16_ROWS), BF16_ROWS)

    # >= 2 parallel steps so a 2-TC chip (v7x) can shard the batch axis.
    per_core = _round_up(pl.cdiv(B, 2), LANE)
    block = min(_round_up(block_b, LANE), per_core)

    def vmem_bytes(blk):
        weights = 2 * 2 * (F_pad * H1 + H1 * H2 + H2 * E_pad)      # bf16, 2 bufs
        biases = 2 * 4 * (H1 + H2 + E_pad)
        x_io = 2 * blk * F_pad * 4                                 # f32 in, 2 bufs
        out_io = 2 * blk * E_pad * 4                               # f32 out, 2 bufs
        act = blk * (F_pad * 2 + (H1 + H2) * 6 + E_pad * 4)        # temporaries
        return weights + biases + x_io + out_io + act

    while block > LANE and vmem_bytes(block) > _VMEM_BUDGET:
        block -= LANE
    return block


@functools.partial(jax.jit, static_argnames=("embedding_size", "block_b"))
def seq_embedding_net(x, params, *, embedding_size, block_b=512):
    """x: (B, C, L) float32.  params: output of prepare_params()."""
    B = x.shape[0]
    x2d = x.reshape(B, -1).astype(jnp.float32)  # == torch x.view(B, -1), row-major
    F = x2d.shape[1]

    w1, b1 = params["w1"], params["b1"]
    w2, b2 = params["w2"], params["b2"]
    w3, b3 = params["w3"], params["b3"]
    F_pad, H1 = w1.shape
    H2, E_pad = w3.shape

    # Lane-align the feature dim to match the padded w1 (no-op when C*L % 128 == 0).
    if F_pad != F:
        x2d = jnp.pad(x2d, ((0, 0), (0, F_pad - F)))

    # Batch tiling; ragged batches padded with zero rows (sliced off below).
    block = _pick_block(B, F_pad, H1, H2, E_pad, block_b)
    n_steps = pl.cdiv(B, block)
    B_pad = n_steps * block
    if B_pad != B:
        x2d = jnp.pad(x2d, ((0, B_pad - B), (0, 0)))

    full = lambda shape: pl.BlockSpec(shape, lambda i: (0,) * len(shape))

    out = pl.pallas_call(
        _mlp_kernel,
        out_shape=jax.ShapeDtypeStruct((B_pad, E_pad), jnp.float32),
        grid_spec=pltpu.PrefetchScalarGridSpec(
            num_scalar_prefetch=0,
            grid=(n_steps,),
            in_specs=[
                pl.BlockSpec((block, F_pad), lambda i: (i, 0)),   # x tile (streamed)
                full((F_pad, H1)), full((1, H1)),                  # fc1 (VMEM-resident)
                full((H1, H2)), full((1, H2)),                     # fc2 (VMEM-resident)
                full((H2, E_pad)), full((1, E_pad)),               # fc3 (resident, padded)
            ],
            out_specs=pl.BlockSpec((block, E_pad), lambda i: (i, 0)),
        ),
        compiler_params=pltpu.CompilerParams(
            dimension_semantics=("parallel",),
            vmem_limit_bytes=_VMEM_LIMIT,
        ),
    )(x2d, w1, b1, w2, b2, w3, b3)

    return out[:B, :embedding_size]


def init_params(key, input_channels, input_length, embedding_size):
    """PyTorch-style Linear init U[-1/sqrt(fan_in), 1/sqrt(fan_in)].

    Weights stored transposed: shape (in_features, out_features).
    """
    fan_in1 = input_channels * input_length
    dims = [(fan_in1, 256), (256, 128), (128, embedding_size)]
    params = {}
    keys = jax.random.split(key, 2 * len(dims))
    for idx, (fin, fout) in enumerate(dims):
        bound = 1.0 / (fin ** 0.5)
        w = jax.random.uniform(keys[2 * idx], (fin, fout), jnp.float32,
                               minval=-bound, maxval=bound)
        b = jax.random.uniform(keys[2 * idx + 1], (1, fout), jnp.float32,
                               minval=-bound, maxval=bound)
        params[f"w{idx + 1}"] = w
        params[f"b{idx + 1}"] = b
    return params


def _bf16_reference(x2d, params):
    """Pure-JAX reference using the same bf16-input / f32-accumulate arithmetic."""
    xb = x2d.astype(jnp.bfloat16)
    w1b = params["w1"].astype(jnp.bfloat16)
    w2b = params["w2"].astype(jnp.bfloat16)
    w3b = params["w3"].astype(jnp.bfloat16)
    h = jnp.maximum(
        jnp.dot(xb, w1b, preferred_element_type=jnp.float32) + params["b1"], 0.0)
    h = jnp.maximum(
        jnp.dot(h.astype(jnp.bfloat16), w2b,
                preferred_element_type=jnp.float32) + params["b2"], 0.0)
    return jnp.dot(h.astype(jnp.bfloat16), w3b,
                   preferred_element_type=jnp.float32) + params["b3"]


if __name__ == "__main__":
    # Small shapes consistent with the module: (B, C, L) sequence input.
    B, C, L, EMB = 16, 3, 128, 32

    key = jax.random.PRNGKey(0)
    k_x, k_p, k_x2 = jax.random.split(key, 3)
    x = jax.random.normal(k_x, (B, C, L), jnp.float32)
    params = init_params(k_p, input_channels=C, input_length=L, embedding_size=EMB)
    kparams = prepare_params(params)   # one-time bf16 cast + lane padding

    # --- small-batch path (single grid step of 16 rows) ----------------------
    out = seq_embedding_net(x, kparams, embedding_size=EMB)
    out = jax.block_until_ready(out)
    assert out.shape == (B, EMB)

    x2d = x.reshape(B, -1)
    ref = _bf16_reference(x2d, params)
    assert jnp.allclose(out, ref, atol=2e-2, rtol=2e-2)

    # Loose sanity check against the pure-f32 math as well.
    ref32 = jnp.maximum(x2d @ params["w1"] + params["b1"], 0.0)
    ref32 = jnp.maximum(ref32 @ params["w2"] + params["b2"], 0.0)
    ref32 = ref32 @ params["w3"] + params["b3"]
    assert jnp.allclose(out, ref32, atol=5e-2, rtol=5e-2)

    # --- ragged / multi-step path (2 parallel grid steps, zero-row padding) --
    B2 = 272
    x_big = jax.random.normal(k_x2, (B2, C, L), jnp.float32)
    out_big = seq_embedding_net(x_big, kparams, embedding_size=EMB)
    out_big = jax.block_until_ready(out_big)
    assert out_big.shape == (B2, EMB)
    ref_big = _bf16_reference(x_big.reshape(B2, -1), params)
    assert jnp.allclose(out_big, ref_big, atol=2e-2, rtol=2e-2)

    print("KERNEL_OK")
</pallas_src>

<mosaic_0001>
module attributes {stable_mosaic.version = 11 : i64} {
  func.func @_mlp_kernel(%arg0: i32, %arg1: memref<16x384xf32, #tpu.memory_space<vmem>>, %arg2: memref<384x256xbf16, #tpu.memory_space<vmem>>, %arg3: memref<1x256xf32, #tpu.memory_space<vmem>>, %arg4: memref<256x128xbf16, #tpu.memory_space<vmem>>, %arg5: memref<1x128xf32, #tpu.memory_space<vmem>>, %arg6: memref<128x128xbf16, #tpu.memory_space<vmem>>, %arg7: memref<1x128xf32, #tpu.memory_space<vmem>>, %arg8: memref<16x128xf32, #tpu.memory_space<vmem>>) attributes {dimension_semantics = [#tpu.dimension_semantics<parallel>], iteration_bounds = array<i64: 1>, scalar_prefetch = 0 : i64, scratch_operands = 0 : i64, tpu.core_type = #tpu.core_type<tc>, window_params = [{transform_indices = @transform_0, window_bounds = array<i64: 16, 384>}, {pipeline_mode = #tpu.pipeline_mode<synchronous>, transform_indices = @transform_1, window_bounds = array<i64: 384, 256>}, {pipeline_mode = #tpu.pipeline_mode<synchronous>, transform_indices = @transform_2, window_bounds = array<i64: 1, 256>}, {pipeline_mode = #tpu.pipeline_mode<synchronous>, transform_indices = @transform_3, window_bounds = array<i64: 256, 128>}, {pipeline_mode = #tpu.pipeline_mode<synchronous>, transform_indices = @transform_4, window_bounds = array<i64: 1, 128>}, {pipeline_mode = #tpu.pipeline_mode<synchronous>, transform_indices = @transform_5, window_bounds = array<i64: 128, 128>}, {pipeline_mode = #tpu.pipeline_mode<synchronous>, transform_indices = @transform_6, window_bounds = array<i64: 1, 128>}, {transform_indices = @transform_7, window_bounds = array<i64: 16, 128>}]} {
    %c0 = arith.constant 0 : index
    %c0_0 = arith.constant 0 : index
    %0 = vector.load %arg1[%c0, %c0_0] : memref<16x384xf32, #tpu.memory_space<vmem>>, vector<16x384xf32>
    %1 = arith.truncf %0 : vector<16x384xf32> to vector<16x384xbf16>
    %c0_1 = arith.constant 0 : index
    %c0_2 = arith.constant 0 : index
    %2 = vector.load %arg2[%c0_1, %c0_2] : memref<384x256xbf16, #tpu.memory_space<vmem>>, vector<384x256xbf16>
    %cst = arith.constant dense<0.000000e+00> : vector<16x256xf32>
    %3 = tpu.matmul %1, %2, %cst {dimension_numbers = #tpu.dot_dimension_numbers<[1], [0], [0], [1], [0, 0, 1, 1], [], []>} : vector<16x384xbf16>, vector<384x256xbf16>, vector<16x256xf32> -> vector<16x256xf32>
    %c0_3 = arith.constant 0 : index
    %c0_4 = arith.constant 0 : index
    %4 = vector.load %arg3[%c0_3, %c0_4] : memref<1x256xf32, #tpu.memory_space<vmem>>, vector<1x256xf32>
    %5 = vector.broadcast %4 : vector<1x256xf32> to vector<16x256xf32>
    %6 = arith.addf %3, %5 : vector<16x256xf32>
    %cst_5 = arith.constant 0.000000e+00 : f32
    %7 = vector.broadcast %cst_5 : f32 to vector<16x256xf32>
    %8 = arith.maximumf %6, %7 : vector<16x256xf32>
    %9 = arith.truncf %8 : vector<16x256xf32> to vector<16x256xbf16>
    %c0_6 = arith.constant 0 : index
    %c0_7 = arith.constant 0 : index
    %10 = vector.load %arg4[%c0_6, %c0_7] : memref<256x128xbf16, #tpu.memory_space<vmem>>, vector<256x128xbf16>
    %cst_8 = arith.constant dense<0.000000e+00> : vector<16x128xf32>
    %11 = tpu.matmul %9, %10, %cst_8 {dimension_numbers = #tpu.dot_dimension_numbers<[1], [0], [0], [1], [0, 0, 1, 1], [], []>} : vector<16x256xbf16>, vector<256x128xbf16>, vector<16x128xf32> -> vector<16x128xf32>
    %c0_9 = arith.constant 0 : index
    %c0_10 = arith.constant 0 : index
    %12 = vector.load %arg5[%c0_9, %c0_10] : memref<1x128xf32, #tpu.memory_space<vmem>>, vector<1x128xf32>
    %13 = vector.broadcast %12 : vector<1x128xf32> to vector<16x128xf32>
    %14 = arith.addf %11, %13 : vector<16x128xf32>
    %cst_11 = arith.constant 0.000000e+00 : f32
    %15 = vector.broadcast %cst_11 : f32 to vector<16x128xf32>
    %16 = arith.maximumf %14, %15 : vector<16x128xf32>
    %17 = arith.truncf %16 : vector<16x128xf32> to vector<16x128xbf16>
    %c0_12 = arith.constant 0 : index
    %c0_13 = arith.constant 0 : index
    %18 = vector.load %arg6[%c0_12, %c0_13] : memref<128x128xbf16, #tpu.memory_space<vmem>>, vector<128x128xbf16>
    %cst_14 = arith.constant dense<0.000000e+00> : vector<16x128xf32>
    %19 = tpu.matmul %17, %18, %cst_14 {dimension_numbers = #tpu.dot_dimension_numbers<[1], [0], [0], [1], [0, 0, 1, 1], [], []>} : vector<16x128xbf16>, vector<128x128xbf16>, vector<16x128xf32> -> vector<16x128xf32>
    %c0_15 = arith.constant 0 : index
    %c0_16 = arith.constant 0 : index
    %20 = vector.load %arg7[%c0_15, %c0_16] : memref<1x128xf32, #tpu.memory_space<vmem>>, vector<1x128xf32>
    %21 = vector.broadcast %20 : vector<1x128xf32> to vector<16x128xf32>
    %22 = arith.addf %19, %21 : vector<16x128xf32>
    %c0_17 = arith.constant 0 : index
    %c0_18 = arith.constant 0 : index
    %23 = vector.load %arg8[%c0_17, %c0_18] : memref<16x128xf32, #tpu.memory_space<vmem>>, vector<16x128xf32>
    tpu.vector_store %arg8[%c0_17, %c0_18], %22 {strides = array<i32>} : memref<16x128xf32, #tpu.memory_space<vmem>>, vector<16x128xf32>,
    return
  }
  func.func @transform_0(%arg0: i32) -> (i32, i32) {
    %c0_i32 = arith.constant 0 : i32
    %c0_i32_0 = arith.constant 0 : i32
    return %arg0, %c0_i32 : i32, i32
  }
  func.func @transform_1(%arg0: i32) -> (i32, i32) {
    %c0_i32 = arith.constant 0 : i32
    %c0_i32_0 = arith.constant 0 : i32
    %c0_i32_1 = arith.constant 0 : i32
    return %c0_i32, %c0_i32_0 : i32, i32
  }
  func.func @transform_2(%arg0: i32) -> (i32, i32) {
    %c0_i32 = arith.constant 0 : i32
    %c0_i32_0 = arith.constant 0 : i32
    %c0_i32_1 = arith.constant 0 : i32
    return %c0_i32, %c0_i32_0 : i32, i32
  }
  func.func @transform_3(%arg0: i32) -> (i32, i32) {
    %c0_i32 = arith.constant 0 : i32
    %c0_i32_0 = arith.constant 0 : i32
    %c0_i32_1 = arith.constant 0 : i32
    return %c0_i32, %c0_i32_0 : i32, i32
  }
  func.func @transform_4(%arg0: i32) -> (i32, i32) {
    %c0_i32 = arith.constant 0 : i32
    %c0_i32_0 = arith.constant 0 : i32
    %c0_i32_1 = arith.constant 0 : i32
    return %c0_i32, %c0_i32_0 : i32, i32
  }
  func.func @transform_5(%arg0: i32) -> (i32, i32) {
    %c0_i32 = arith.constant 0 : i32
    %c0_i32_0 = arith.constant 0 : i32
    %c0_i32_1 = arith.constant 0 : i32
    return %c0_i32, %c0_i32_0 : i32, i32
  }
  func.func @transform_6(%arg0: i32) -> (i32, i32) {
    %c0_i32 = arith.constant 0 : i32
    %c0_i32_0 = arith.constant 0 : i32
    %c0_i32_1 = arith.constant 0 : i32
    return %c0_i32, %c0_i32_0 : i32, i32
  }
  func.func @transform_7(%arg0: i32) -> (i32, i32) {
    %c0_i32 = arith.constant 0 : i32
    %c0_i32_0 = arith.constant 0 : i32
    return %arg0, %c0_i32 : i32, i32
  }
}

</mosaic_0001>

<bundles_post_ra>
// kernel: seq_embedding_net.1
= control target key start
LH: loop header
LB: loop body
LE: loop exit
PB: predicated region body
PF: predicated region fallthrough
CT: control target
= control target key end

     0   :  { %12 = vsyncpa [#allocation3], 0  ;;  %s1222_s0 = inlined_call_operand.vmem [shape: f32[16,384], index: 0, kind: input, shape index: {}]   ;;  %s1223_s1 = inlined_call_operand.hbm [shape: bf16[384,256], index: 1, kind: input, shape index: {}]   ;;  %s1224_s2 = inlined_call_operand.vmem [shape: f32[1,256], index: 2, kind: input, shape index: {}]   ;;  %s1225_s3 = inlined_call_operand.hbm [shape: bf16[256,128], index: 3, kind: input, shape index: {}]   ;;  %s1226_s4 = inlined_call_operand.vmem [shape: f32[1,128], index: 4, kind: input, shape index: {}]   ;;  %s1227_s5 = inlined_call_operand.vmem [shape: bf16[128,128], index: 5, kind: input, shape index: {}]   ;;  %s1228_s6 = inlined_call_operand.vmem [shape: f32[1,128], index: 6, kind: input, shape index: {}]   ;;  %s1229_s7 = inlined_call_operand.hbm [shape: f32[16,128], index: 7, kind: output, shape index: {}]  }
   0x1   :  { %13 = vsyncpa [#allocation6], 0 }
   0x2   :  { %14 = vsyncpa [#allocation4], 0  ;;  %s1079_s24 = smov [#allocation2]   ;;  %s1007_s28 = scalar_lea.hbm %s1223_s1, 6144 }
   0x3   :  { %s22_s25 = sshll.u32 %s1079_s24, 4  ;;  %p1008_p0 = scmp.ne.s32.totalorder %s1223_s1, %s1007_s28  ;;  %s23_s25 = int_to_ptr.vmem [resolvable:$true] %s22_s25 }
   0x4   :  { %p1011_p1 = scmp.lt.u32.totalorder %s1007_s28, %s1223_s1 }
   0x6   :  { %p1013_p2 = pnand %p1011_p1, %p1008_p0 }
   0x8   :  { %1016 = shalt.err (!%p1013_p2)
}
   0x9   :  { %s1017_s10 = scalar_lea.vmem %s23_s25, 6144  ;;  %p1022_p4 = scmp.lt.s32.totalorder %s23_s25, %s23_s25 }
   0xa   :  { %p1018_p3 = scmp.ne.s32.totalorder %s23_s25, %s1017_s10  ;;  %p1023_p5 = scmp.lt.s32.totalorder %s1017_s10, %s1017_s10 }
   0xc   :  { %p1024_p6 = por %p1023_p5, %p1022_p4 }
   0xe   :  { %p1025_p7 = pnand %p1024_p6, %p1018_p3 }
  0x10   :  { %1028 = shalt.err (!%p1025_p7)
}
  0x11   :  { %s1080_s11 = smov 128   ;;  %s1081_s12 = smov 8  }
  0x12   :  { %28 = dma.hbm_to_vmem [thread:$0]  %s1223_s1, 6144, %s23_s25, [#allocation3], %s1080_s11, %s1080_s11, %s1081_s12  }
  0x13   :  { %s1082_s15 = smov [#allocation5]   ;;  %s1029_s19 = scalar_lea.hbm %s1225_s3, 2048 }
  0x14   :  { %s36_s16 = sshll.u32 %s1082_s15, 4  ;;  %p1030_p8 = scmp.ne.s32.totalorder %s1225_s3, %s1029_s19  ;;  %s37_s16 = int_to_ptr.vmem [resolvable:$true] %s36_s16 }
  0x15   :  { %p1033_p9 = scmp.lt.u32.totalorder %s1029_s19, %s1225_s3 }
  0x17   :  { %p1035_p10 = pnand %p1033_p9, %p1030_p8 }
  0x19   :  { %1038 = shalt.err (!%p1035_p10)
}
  0x1a   :  { %s1039_s24 = scalar_lea.vmem %s37_s16, 2048  ;;  %p1044_p12 = scmp.lt.s32.totalorder %s37_s16, %s37_s16 }
  0x1b   :  { %p1040_p11 = scmp.ne.s32.totalorder %s37_s16, %s1039_s24  ;;  %p1045_p13 = scmp.lt.s32.totalorder %s1039_s24, %s1039_s24 }
  0x1d   :  { %p1046_p0 = por %p1045_p13, %p1044_p12 }
  0x1f   :  { %p1047_p1 = pnand %p1046_p0, %p1040_p11 }
  0x21   :  { %1050 = shalt.err (!%p1047_p1)
}
  0x22   :  { %s1083_s1 = smov 64   ;;  %s1084_s25 = smov 4  }
  0x23   :  { %42 = dma.hbm_to_vmem [thread:$0]  %s1225_s3, 2048, %s37_s16, [#allocation6], %s1083_s1, %s1083_s1, %s1084_s25  }
  0x24   :  { %1073 = dma.done.wait [#allocation3], 6144  }
  0x25   :  { %1074 = vsyncadd [#allocation3], 4294961152 }
  0x26   :  { %1075 = dma.done.wait [#allocation6], 2048  }
  0x27   :  { %1076 = vsyncadd [#allocation6], 4294965248  ;;  %v911_v0 = vld [vmem:[#allocation2 + $0x4] ss:$8 sps:$4 sm:$0xff]   ;;  %v913_v1 = vld [vmem:[#allocation2] ss:$8 sps:$4 sm:$0xff]  }
  0x28   :  { %365 = vmatprep.subr.bf16.mxu0 %v911_v0  ;;  %v914_v2 = vld [vmem:[#allocation2 + $0x14] ss:$8 sps:$4 sm:$0xff]   ;;  %v916_v3 = vld [vmem:[#allocation2 + $0x10] ss:$8 sps:$4 sm:$0xff]   ;;  %v917_v4 = vld [vmem:[#allocation2 + $0x24] ss:$8 sps:$4 sm:$0xff]  }
  0x29   :  { %366 = vmatpush1.bf16.msra.mxu0 %v913_v1  ;;  %v919_v5 = vld [vmem:[#allocation2 + $0x20] ss:$8 sps:$4 sm:$0xff]   ;;  %v920_v6 = vld [vmem:[#allocation2 + $0x34] ss:$8 sps:$4 sm:$0xff]   ;;  %v922_v7 = vld [vmem:[#allocation2 + $0x30] ss:$8 sps:$4 sm:$0xff]  }
  0x2a   :  { %367 = vmatprep.subr.bf16.mxu0 %v914_v2  ;;  %v923_v8 = vld [vmem:[#allocation2 + $0x44] ss:$8 sps:$4 sm:$0xff]   ;;  %v925_v9 = vld [vmem:[#allocation2 + $0x40] ss:$8 sps:$4 sm:$0xff]   ;;  %v926_v10 = vld [vmem:[#allocation2 + $0x54] ss:$8 sps:$4 sm:$0xff]  }
  0x2b   :  { %v928_v11 = vld [vmem:[#allocation2 + $0x50] ss:$8 sps:$4 sm:$0xff]   ;;  %v929_v12 = vld [vmem:[#allocation2 + $0x64] ss:$8 sps:$4 sm:$0xff]   ;;  %v931_v16 = vld [vmem:[#allocation2 + $0x60] ss:$8 sps:$4 sm:$0xff]  }
  0x2c   :  { %v57_v13 = vld [vmem:[%s1222_s0 + $0x8] sm:$0xff]  ;;  %v60_v14 = vld [vmem:[%s1222_s0 + $0x20] sm:$0xff]  ;;  %v932_v17 = vld [vmem:[#allocation2 + $0x74] ss:$8 sps:$4 sm:$0xff]   ;;  %v1085_v53 = vmov 0   ;;  %vm1087_vm0 = vmmov 0  }
  0x2d   :  { %368 = vmatpush1.bf16.msra.mxu0 %v916_v3  ;;  %v63_v15 = vpack.c.bf16 %v60_v14, %v57_v13  ;;  %v934_v18 = vld [vmem:[#allocation2 + $0x70] ss:$8 sps:$4 sm:$0xff]   ;;  %v935_v19 = vld [vmem:[#allocation2 + $0x84] ss:$8 sps:$4 sm:$0xff]   ;;  %v937_v20 = vld [vmem:[#allocation2 + $0x80] ss:$8 sps:$4 sm:$0xff]  }
  0x2e   :  { %369 = vmatprep.subr.bf16.mxu0 %v917_v4  ;;  %v938_v21 = vld [vmem:[#allocation2 + $0x94] ss:$8 sps:$4 sm:$0xff]   ;;  %v940_v22 = vld [vmem:[#allocation2 + $0x90] ss:$8 sps:$4 sm:$0xff]   ;;  %v941_v23 = vld [vmem:[#allocation2 + $0xa4] ss:$8 sps:$4 sm:$0xff]  }
  0x2f   :  { %397 = vmatprep.mubr.bf16.mxu0 %v63_v15  ;;  %v983_v24 = vld [vmem:[#allocation5 + $0x40] sm:$0xff]   ;;  %v985_v26 = vld [vmem:[#allocation5 + $0x48] sm:$0xff]   ;;  %v987_v28 = vld [vmem:[#allocation5 + $0x50] sm:$0xff]   ;;  %s1088_s14 = smov [#allocation7]  }
  0x30   :  { %v984_v25 = vld [vmem:[#allocation5] sm:$0xff]   ;;  %842 = vmatprep.subr.bf16.mxu1 %v983_v24  ;;  %v986_v27 = vld [vmem:[#allocation5 + $0x8] sm:$0xff]   ;;  %v944_v30 = vld [vmem:[#allocation2 + $0xb4] ss:$8 sps:$4 sm:$0xff]   ;;  %s755_s15 = sshll.u32 %s1088_s14, 4  ;;  %s756_s15 = int_to_ptr.vmem [resolvable:$true] %s755_s15 }
  0x31   :  { %370 = vmatpush1.bf16.msra.mxu0 %v919_v5  ;;  %843 = vmatpush3.bf16.msra.mxu1 %v984_v25  ;;  %v943_v29 = vld [vmem:[#allocation2 + $0xa0] ss:$8 sps:$4 sm:$0xff]   ;;  %v946_v31 = vld [vmem:[#allocation2 + $0xb0] ss:$8 sps:$4 sm:$0xff]   ;;  %v947_v34 = vld [vmem:[#allocation2 + $0xc4] ss:$8 sps:$4 sm:$0xff]   ;;  %p1056_p3 = scmp.lt.s32.totalorder %s756_s15, %s756_s15 }
  0x32   :  { %371 = vmatprep.subr.bf16.mxu0 %v920_v6  ;;  %844 = vmatprep.subr.bf16.mxu1 %v985_v26  ;;  %v988_v32 = vld [vmem:[#allocation5 + $0x10] sm:$0xff]   ;;  %v989_v33 = vld [vmem:[#allocation5 + $0x58] sm:$0xff]   ;;  %v949_v36 = vld [vmem:[#allocation2 + $0xc0] ss:$8 sps:$4 sm:$0xff]  }
  0x33   :  { %v990_v35 = vld [vmem:[#allocation5 + $0x18] sm:$0xff]   ;;  %v991_v37 = vld [vmem:[#allocation5 + $0x60] sm:$0xff]   ;;  %v993_v40 = vld [vmem:[#allocation5 + $0x68] sm:$0xff]  }
  0x34   :  { %v950_v38 = vld [vmem:[#allocation2 + $0xd4] ss:$8 sps:$4 sm:$0xff]   ;;  %v992_v39 = vld [vmem:[#allocation5 + $0x20] sm:$0xff]   ;;  %v952_v41 = vld [vmem:[#allocation2 + $0xd0] ss:$8 sps:$4 sm:$0xff]  }
  0x35   :  { %372 = vmatpush1.bf16.msra.mxu0 %v922_v7  ;;  %845 = vmatpush3.bf16.msra.mxu1 %v986_v27  ;;  %v953_v42 = vld [vmem:[#allocation2 + $0xe4] ss:$8 sps:$4 sm:$0xff]   ;;  %v955_v43 = vld [vmem:[#allocation2 + $0xe0] ss:$8 sps:$4 sm:$0xff]   ;;  %v956_v44 = vld [vmem:[#allocation2 + $0xf4] ss:$8 sps:$4 sm:$0xff]  }
  0x36   :  { %373 = vmatprep.subr.bf16.mxu0 %v923_v8  ;;  %846 = vmatprep.subr.bf16.mxu1 %v987_v28  ;;  %v958_v45 = vld [vmem:[#allocation2 + $0xf0] ss:$8 sps:$4 sm:$0xff]   ;;  %v56_v46 = vld [vmem:[%s1222_s0] sm:$0xff]  ;;  %v964_v51 = vld [vmem:[#allocation2 + $0x114] ss:$8 sps:$4 sm:$0xff]  }
  0x37   :  { %v59_v47 = vld [vmem:[%s1222_s0 + $0x18] sm:$0xff]  ;;  %v961_v48 = vld [vmem:[#allocation2 + $0x104] ss:$8 sps:$4 sm:$0xff]   ;;  %v959_v50 = vld [vmem:[#allocation2 + $0x100] ss:$8 sps:$4 sm:$0xff]  }
  0x38   :  { %v62_v49 = vpack.c.bf16 %v59_v47, %v56_v46  ;;  %v962_v52 = vld [vmem:[#allocation2 + $0x110] ss:$8 sps:$4 sm:$0xff]   ;;  %v967_v54 = vld [vmem:[#allocation2 + $0x124] ss:$8 sps:$4 sm:$0xff]   ;;  %v965_v55 = vld [vmem:[#allocation2 + $0x120] ss:$8 sps:$4 sm:$0xff]  }
  0x39   :  { %374 = vmatpush1.bf16.msra.mxu0 %v925_v9  ;;  %847 = vmatpush3.bf16.msra.mxu1 %v988_v32  ;;  %v970_v56 = vld [vmem:[#allocation2 + $0x134] ss:$8 sps:$4 sm:$0xff]   ;;  %v968_v57 = vld [vmem:[#allocation2 + $0x130] ss:$8 sps:$4 sm:$0xff]   ;;  %v973_v58 = vld [vmem:[#allocation2 + $0x144] ss:$8 sps:$4 sm:$0xff]  }
  0x3a   :  { %375 = vmatprep.subr.bf16.mxu0 %v926_v10  ;;  %848 = vmatprep.subr.bf16.mxu1 %v989_v33  ;;  %v971_v59 = vld [vmem:[#allocation2 + $0x140] ss:$8 sps:$4 sm:$0xff]   ;;  %v976_v60 = vld [vmem:[#allocation2 + $0x154] ss:$8 sps:$4 sm:$0xff]   ;;  %v974_v61 = vld [vmem:[#allocation2 + $0x150] ss:$8 sps:$4 sm:$0xff]  }
  0x3b   :  { %v979_v62 = vld [vmem:[#allocation2 + $0x164] ss:$8 sps:$4 sm:$0xff]   ;;  %v977_v63 = vld [vmem:[#allocation2 + $0x160] ss:$8 sps:$4 sm:$0xff]   ;;  %v982_v0 = vld [vmem:[#allocation2 + $0x174] ss:$8 sps:$4 sm:$0xff]  }
  0x3c   :  { %v980_v1 = vld [vmem:[#allocation2 + $0x170] ss:$8 sps:$4 sm:$0xff]   ;;  %v61_v3 = vld [vmem:[%s1222_s0 + $0x28] sm:$0xff]  ;;  %v1086_v10 = vmov 0.0   ;;  %v113_v14 = vld [vmem:[%s1224_s2] sm:$0x3] }
  0x3d   :  { %376 = vmatpush1.bf16.msra.mxu0 %v928_v11  ;;  %849 = vmatpush3.bf16.msra.mxu1 %v990_v35  ;;  %v58_v2 = vld [vmem:[%s1222_s0 + $0x10] sm:$0xff]  ;;  %v994_v5 = vld [vmem:[#allocation5 + $0x28] sm:$0xff]   ;;  %v997_v8 = vld [vmem:[#allocation5 + $0x78] sm:$0xff]   ;;  %v115_v11 = vlaneseq }
  0x3e   :  { %377 = vmatprep.subr.bf16.mxu0 %v929_v12  ;;  %850 = vmatprep.subr.bf16.mxu1 %v991_v37  ;;  %v64_v4 = vpack.c.bf16 %v61_v3, %v58_v2  ;;  %v995_v6 = vld [vmem:[#allocation5 + $0x70] sm:$0xff]   ;;  %v998_v9 = vld [vmem:[#allocation5 + $0x38] sm:$0xff]   ;;  %v999_v32 = vld [vmem:[%s1227_s5] sm:$0xff]  }
  0x3f   :  { %v996_v7 = vld [vmem:[#allocation5 + $0x30] sm:$0xff]   ;;  %v116_v12 = vshrl.u32 %v115_v11, 7  ;;  %v1000_v33 = vld [vmem:[%s1227_s5 + $0x8] sm:$0xff]   ;;  %v1002_v35 = vld [vmem:[%s1227_s5 + $0x18] sm:$0xff]  }
  0x40   :  { %v1004_v37 = vld [vmem:[%s1227_s5 + $0x28] sm:$0xff]  }
  0x41   :  { %378 = vmatpush1.bf16.msra.mxu0 %v931_v16  ;;  %851 = vmatpush3.bf16.msra.mxu1 %v992_v39  ;;  %v117_v13 = vsub.s32 0, %v116_v12  ;;  %v121_v15 = vsub.s32 1, %v116_v12  ;;  %v1006_v39 = vld [vmem:[%s1227_s5 + $0x38] sm:$0xff]  }
  0x42   :  { %379 = vmatprep.subr.bf16.mxu0 %v932_v17  ;;  %852 = vmatprep.subr.bf16.mxu1 %v993_v40 }
  0x43   :  { %v118_v16 = vrot.slane %v113_v14, %v117_v13  ;;  %v122_v17 = vrot.slane %v113_v14, %v121_v15 }
  0x45   :  { %380 = vmatpush1.bf16.msra.mxu0 %v934_v18  ;;  %853 = vmatpush3.bf16.msra.mxu1 %v994_v5 }
  0x46   :  { %381 = vmatprep.subr.bf16.mxu0 %v935_v19  ;;  %854 = vmatprep.subr.bf16.mxu1 %v995_v6 }
  0x49   :  { %382 = vmatpush1.bf16.msra.mxu0 %v937_v20  ;;  %855 = vmatpush3.bf16.msra.mxu1 %v996_v7 }
  0x4a   :  { %383 = vmatprep.subr.bf16.mxu0 %v938_v21  ;;  %856 = vmatprep.subr.bf16.mxu1 %v997_v8 }
  0x4d   :  { %384 = vmatpush1.bf16.msra.mxu0 %v940_v22  ;;  %857 = vmatpush3.bf16.msra.mxu1 %v998_v9 }
  0x4e   :  { %385 = vmatprep.subr.bf16.mxu0 %v941_v23  ;;  %873 = vmatprep.subr.bf16.mxu1 %v1086_v10 }
  0x51   :  { %386 = vmatpush1.bf16.msra.mxu0 %v943_v29 }
  0x52   :  { %387 = vmatprep.subr.bf16.mxu0 %v944_v30 }
  0x55   :  { %388 = vmatpush1.bf16.msra.mxu0 %v946_v31 }
  0x56   :  { %389 = vmatprep.subr.bf16.mxu0 %v947_v34  ;;  %v1001_v34 = vld [vmem:[%s1227_s5 + $0x10] sm:$0xff]  }
  0x59   :  { %390 = vmatpush1.bf16.msra.mxu0 %v949_v36  ;;  %v1003_v36 = vld [vmem:[%s1227_s5 + $0x20] sm:$0xff]  }
  0x5a   :  { %391 = vmatprep.subr.bf16.mxu0 %v950_v38  ;;  %v1005_v38 = vld [vmem:[%s1227_s5 + $0x30] sm:$0xff]  }
  0x5d   :  { %392 = vmatpush1.bf16.msra.mxu0 %v952_v41  ;;  %v816_v41 = vld [vmem:[%s1226_s4] ss:$0 sm:$0xff]  ;;  %s1051_s4 = scalar_lea.vmem %s756_s15, 256 }
  0x5e   :  { %393 = vmatprep.subr.bf16.mxu0 %v953_v42  ;;  %p1052_p2 = scmp.ne.s32.totalorder %s756_s15, %s1051_s4  ;;  %p1057_p4 = scmp.lt.s32.totalorder %s1051_s4, %s1051_s4 }
  0x60   :  { %p1058_p5 = por %p1057_p4, %p1056_p3 }
  0x61   :  { %394 = vmatpush1.bf16.msra.mxu0 %v955_v43 }
  0x62   :  { %395 = vmatprep.subr.bf16.mxu0 %v956_v44  ;;  %p1059_p6 = pnand %p1058_p5, %p1052_p2 }
  0x65   :  { %396 = vmatpush1.bf16.msra.mxu0 %v958_v45 }
  0x66   :  { %408 = vmatprep.subr.bf16.mxu0 %v961_v48 }
  0x68   :  { %398 = vmatmul.mubr.bf16.vlgmr.msra.gmra.mrb[0].mxu0 %v62_v49 }
  0x69   :  { %409 = vmatpush1.bf16.msra.mxu0 %v959_v50  ;;  %440 = vmatprep.mubr.bf16.mxu0 %v1085_v53 }
  0x6a   :  { %410 = vmatprep.subr.bf16.mxu0 %v964_v51 }
  0x6d   :  { %411 = vmatpush1.bf16.msra.mxu0 %v962_v52  ;;  %v833_v52 = vld [vmem:[%s1228_s6] ss:$0 sm:$0xff] }
  0x6e   :  { %412 = vmatprep.subr.bf16.mxu0 %v967_v54 }
  0x71   :  { %413 = vmatpush1.bf16.msra.mxu0 %v965_v55 }
  0x72   :  { %414 = vmatprep.subr.bf16.mxu0 %v970_v56 }
  0x75   :  { %415 = vmatpush1.bf16.msra.mxu0 %v968_v57 }
  0x76   :  { %416 = vmatprep.subr.bf16.mxu0 %v973_v58 }
  0x79   :  { %417 = vmatpush1.bf16.msra.mxu0 %v971_v59 }
  0x7a   :  { %418 = vmatprep.subr.bf16.mxu0 %v976_v60 }
  0x7d   :  { %419 = vmatpush1.bf16.msra.mxu0 %v974_v61 }
  0x7e   :  { %420 = vmatprep.subr.bf16.mxu0 %v979_v62 }
  0x81   :  { %421 = vmatpush1.bf16.msra.mxu0 %v977_v63 }
  0x82   :  { %422 = vmatprep.subr.bf16.mxu0 %v982_v0 }
  0x85   :  { %423 = vmatpush1.bf16.msra.mxu0 %v980_v1 }
  0x88   :  { %441 = vmatmul.mubr.bf16.vlgmr.msra.gmra.mrb[0].mxu0 %v64_v4 }
 0x15b   :  { %v442_v18 = vpop.f32.mrb[0].mxu0 }
 0x15c   :  { %v893_v19 = vadd.f32 %v442_v18, %v118_v16  ;;  %v444_v20 = vpop.f32.mrb[1].mxu0 }
 0x15d   :  { %v894_v21 = vadd.f32 %v444_v20, %v122_v17  ;;  %v446_v22 = vpop.f32.mrb[2].mxu0 }
 0x15e   :  { %v895_v23 = vadd.f32 %v446_v22, %v118_v16  ;;  %v448_v24 = vpop.f32.mrb[3].mxu0  ;;  %v451_v26 = vmax.f32 %v893_v19, 0.0 }
 0x15f   :  { %v896_v25 = vadd.f32 %v448_v24, %v122_v17  ;;  %v452_v28 = vmax.f32 %v894_v21, 0.0 }
 0x160   :  { %v453_v27 = vmax.f32 %v895_v23, 0.0 }
 0x161   :  { %v454_v29 = vmax.f32 %v896_v25, 0.0 }
 0x162   :  { %v455_v30 = vpack.c.bf16 %v453_v27, %v451_v26 }
 0x163   :  { %v456_v31 = vpack.c.bf16 %v454_v29, %v452_v28 }
 0x165   :  { %624 = vmatprep.mubr.bf16.mxu1 %v456_v31 }
 0x166   :  { %625 = vmatmul.mubr.bf16.vlgmr.msra.gmra.mrb[0].mxu1 %v455_v30 }
 0x167   :  { %874 = vmatpush3.bf16.msra.mxu1 %v999_v32  ;;  %889 = vmatprep.mubr.msk.bf16.mxu1 %vm1087_vm0, %v1086_v10 }
 0x168   :  { %875 = vmatprep.subr.bf16.mxu1 %v1086_v10 }
 0x16b   :  { %876 = vmatpush3.bf16.msra.mxu1 %v1000_v33 }
 0x16c   :  { %877 = vmatprep.subr.bf16.mxu1 %v1086_v10 }
 0x16f   :  { %878 = vmatpush3.bf16.msra.mxu1 %v1001_v34 }
 0x170   :  { %879 = vmatprep.subr.bf16.mxu1 %v1086_v10 }
 0x173   :  { %880 = vmatpush3.bf16.msra.mxu1 %v1002_v35 }
 0x174   :  { %881 = vmatprep.subr.bf16.mxu1 %v1086_v10 }
 0x177   :  { %882 = vmatpush3.bf16.msra.mxu1 %v1003_v36 }
 0x178   :  { %883 = vmatprep.subr.bf16.mxu1 %v1086_v10 }
 0x17b   :  { %884 = vmatpush3.bf16.msra.mxu1 %v1004_v37 }
 0x17c   :  { %885 = vmatprep.subr.bf16.mxu1 %v1086_v10 }
 0x17f   :  { %886 = vmatpush3.bf16.msra.mxu1 %v1005_v38 }
 0x180   :  { %887 = vmatprep.subr.bf16.mxu1 %v1086_v10 }
 0x183   :  { %888 = vmatpush3.bf16.msra.mxu1 %v1006_v39 }
 0x239   :  { %v858_v40 = vpop.f32.mrb[0].mxu1 }
 0x23a   :  { %v859_v42 = vpop.f32.mrb[1].mxu1 }
 0x23b   :  { %v860_v43 = vadd.f32 %v859_v42, %v858_v40  ;;  %v861_v44 = vpop.f32.mrb[2].mxu1 }
 0x23c   :  { %v862_v45 = vpop.f32.mrb[3].mxu1 }
 0x23d   :  { %v627_v46 = vadd.f32 %v860_v43, %v816_v41  ;;  %v863_v47 = vadd.f32 %v862_v45, %v861_v44 }
 0x23f   :  { %v630_v48 = vadd.f32 %v863_v47, %v816_v41  ;;  %v633_v49 = vmax.f32 %v627_v46, 0.0 }
 0x241   :  { %v634_v50 = vmax.f32 %v630_v48, 0.0 }
 0x243   :  { %v635_v51 = vpack.c.bf16 %v634_v50, %v633_v49 }
 0x245   :  { %890 = vmatmul.mubr.bf16.vlgmr.msra.gmra.mrb[4].mxu1 %v635_v51 }
 0x318   :  { %v741_v53 = vpop.f32.mrb[4].mxu1 }
 0x319   :  { %v742_v54 = vadd.f32 %v833_v52, %v741_v53  ;;  %v891_v55 = vpop.f32.mrb[5].mxu1 }
 0x31a   :  { %v744_v56 = vpop.f32.mrb[6].mxu1 }
 0x31b   :  { %748 = vst [vmem:[#allocation7] sm:$0xff] %v742_v54  ;;  %v745_v57 = vadd.f32 %v833_v52, %v744_v56  ;;  %v892_v58 = vpop.f32.mrb[7].mxu1 }
 0x31d   :  { %749 = vst [vmem:[#allocation7 + $0x8] sm:$0xff] %v745_v57 }
 0x31e   :  { %1062 = shalt.err (!%p1059_p6)
}
 0x31f   :  { %s1063_s17 = scalar_lea.hbm %s1229_s7, 256 }
 0x320   :  { %p1064_p7 = scmp.ne.s32.totalorder %s1229_s7, %s1063_s17  ;;  %p1067_p8 = scmp.lt.u32.totalorder %s1063_s17, %s1229_s7 }
 0x322   :  { %p1069_p9 = pnand %p1067_p8, %p1064_p7 }
 0x324   :  { %1072 = shalt.err (!%p1069_p9)
}
 0x325   :  { %761 = dma.vmem_to_hbm [thread:$0]  %s756_s15, 256, %s1229_s7, [#allocation4], %s1080_s11, %s1080_s11, %s1081_s12  }
 0x326   :  { %1077 = dma.done.wait [#allocation4], 256  }
 0x327   :  { %1078 = vsyncadd [#allocation4], 4294967040 }
 0x328   :  { %765 = vsyncpa [#allocation3], 1 }
 0x329   :  { %766 = vsyncpa [#allocation6], 1 }
 0x32a   :  { %767 = vsyncpa [#allocation4], 1 }

</bundles_post_ra>
